<compile_context>
chip_gen: v7x
topology: tpu7x:2x2x1
jax: 0.10.0
libtpu: 0.0.40
codegen_flags: <defaults>
</compile_context>

<pallas_src>
import functools
import math

import jax
import jax.numpy as jnp
from jax.experimental import pallas as pl
from jax.experimental.pallas import tpu as pltpu


_COMPUTE_DTYPE = jnp.bfloat16      # MXU operand / activation storage dtype


# --------------------------------------------------------------------------
# helpers
# --------------------------------------------------------------------------
@functools.lru_cache(maxsize=None)
def _vmem_limit_bytes():
    """Generation-aware scoped-VMEM limit (~85% of physical per-core VMEM)."""
    cap = None
    try:
        info = pltpu.get_tpu_info()
        cap = getattr(info, "vmem_capacity_bytes", None)
    except Exception:
        cap = None
    if not cap:
        return 48 * 1024 * 1024          # conservative fallback (fits v7x)
    return int(cap * 0.85)               # ~54 MiB on v7x, ~109 MiB on v5e/v6e


def _row_tile(dim, target):
    """(tile, pad): tile is a multiple-of-8 divisor of dim (or full axis);
    otherwise fall back to a fixed tile and row padding."""
    if dim <= target:
        return dim, 0
    t = (target // 8) * 8
    while t >= 8:
        if dim % t == 0:
            return t, 0
        t -= 8
    t = 256
    return t, (-dim) % t


def _lane_tile(dim, target):
    """Largest multiple-of-128 divisor of dim <= target, else the full axis."""
    if dim <= target or dim % 128 != 0:
        return dim
    t = (target // 128) * 128
    while t >= 128:
        if dim % t == 0:
            return t
        t -= 128
    return dim


def _q_tile(s, target=512):
    """Query tile: multiple of 8 dividing s, else the full axis."""
    if s <= target:
        return s
    t = (target // 8) * 8
    while t >= 8:
        if s % t == 0:
            return t
        t -= 8
    return s


def _kv_tile(skv, target=512):
    """KV tile: multiple of 128 dividing skv (lane dim of the scores / masks),
    else the full axis."""
    # TODO(synk): for huge, non-128-divisible Skv this falls back to the full
    # axis; pad-and-mask would be needed for truly ragged key lengths.
    return _lane_tile(skv, target)


def _pick_heads_per_block(num_heads, head_dim):
    """Smallest head block whose merged width is a multiple of 128 lanes."""
    for hb in range(1, num_heads):
        if num_heads % hb == 0 and (hb * head_dim) % 128 == 0:
            return hb
    return num_heads  # block covers the full merged dim -> always legal


# --------------------------------------------------------------------------
# Kernel 1: tiled dense projection  y = x @ W_t + b   (W_t pre-transposed)
# --------------------------------------------------------------------------
def _linear_kernel(x_ref, wt_ref, b_ref, o_ref, acc_ref):
    k = pl.program_id(2)

    @pl.when(k == 0)
    def _():
        acc_ref[...] = jnp.zeros_like(acc_ref)

    acc_ref[...] += jnp.dot(
        x_ref[...].astype(jnp.bfloat16),
        wt_ref[...].astype(jnp.bfloat16),
        preferred_element_type=jnp.float32)

    @pl.when(k == pl.num_programs(2) - 1)
    def _():
        o_ref[...] = (acc_ref[...] + b_ref[...].astype(jnp.float32)
                      ).astype(o_ref.dtype)


def pallas_linear(x, w_t, b, out_dtype=None):
    """x: (R, Din), w_t: (Din, Dout) pre-transposed, b: (Dout,) -> (R, Dout)."""
    R, Din = x.shape
    Dout = w_t.shape[1]
    out_dtype = out_dtype or x.dtype

    tm, row_pad = _row_tile(R, 512)
    if row_pad:
        x = jnp.pad(x, ((0, row_pad), (0, 0)))
    Rp = R + row_pad
    tn = _lane_tile(Dout, 512)
    tk = _lane_tile(Din, 1024)

    out = pl.pallas_call(
        _linear_kernel,
        out_shape=jax.ShapeDtypeStruct((Rp, Dout), out_dtype),
        grid_spec=pltpu.PrefetchScalarGridSpec(
            num_scalar_prefetch=0,
            grid=(Rp // tm, Dout // tn, Din // tk),
            in_specs=[
                pl.BlockSpec((tm, tk), lambda i, j, k: (i, k)),
                pl.BlockSpec((tk, tn), lambda i, j, k: (k, j)),
                pl.BlockSpec((1, tn), lambda i, j, k: (0, j)),
            ],
            out_specs=pl.BlockSpec((tm, tn), lambda i, j, k: (i, j)),
            scratch_shapes=[pltpu.VMEM((tm, tn), jnp.float32)],
        ),
        compiler_params=pltpu.CompilerParams(
            dimension_semantics=("parallel", "parallel", "arbitrary"),
            vmem_limit_bytes=_vmem_limit_bytes()),
    )(x, w_t, b.reshape(1, Dout))
    return out[:R] if row_pad else out


# --------------------------------------------------------------------------
# Kernel 2: flash-style scaled dot-product attention.
# Grid = (head_block, batch, q_tile, kv_tile); online softmax over the kv axis
# with (m, l, acc) VMEM scratch.  Activations stay in merged (.., Hb*D) layout;
# Q/K/V may live at constant last-dim offsets inside one fused buffer.
# --------------------------------------------------------------------------
def _attn_kernel(*refs, heads_per_blk, head_dim, has_kpm, has_am, am_per_head):
    i = 0
    q_ref = refs[i]; i += 1                   # (1, Tq,  Hb*D) bf16
    k_ref = refs[i]; i += 1                   # (1, Tkv, Hb*D) bf16
    v_ref = refs[i]; i += 1                   # (1, Tkv, Hb*D) bf16
    kpm_ref = None
    am_ref = None
    if has_kpm:
        kpm_ref = refs[i]; i += 1             # (1, 1, Tkv) additive f32
    if has_am:
        am_ref = refs[i]; i += 1              # (Hb|1, Tq, Tkv) additive bf16
    o_ref = refs[i]; i += 1                   # (1, Tq, Hb*D)
    m_ref = refs[i]; i += 1                   # (Hb, Tq, 1) f32 scratch
    l_ref = refs[i]; i += 1                   # (Hb, Tq, 1) f32 scratch
    acc_ref = refs[i]                         # (Hb, Tq, D) f32 scratch

    ki = pl.program_id(3)
    nk = pl.num_programs(3)
    D = head_dim

    @pl.when(ki == 0)
    def _():
        m_ref[...] = jnp.full_like(m_ref, -1e30)
        l_ref[...] = jnp.zeros_like(l_ref)
        acc_ref[...] = jnp.zeros_like(acc_ref)

    # Static unroll over the (small) head block; with kv tiling the live
    # intermediates per head are only (Tq, Tkv), so vreg pressure stays bounded.
    for h in range(heads_per_blk):
        lo = h * D
        qh = q_ref[0, :, lo:lo + D]           # (Tq,  D) bf16 (1/sqrt(D) folded in)
        kh = k_ref[0, :, lo:lo + D]           # (Tkv, D) bf16
        vh = v_ref[0, :, lo:lo + D]           # (Tkv, D) bf16

        # QK^T without materializing k.T: contract last dims on the MXU.
        s = jax.lax.dot_general(
            qh, kh, (((1,), (1,)), ((), ())),
            preferred_element_type=jnp.float32)               # (Tq, Tkv) f32
        if has_kpm:
            s = s + kpm_ref[0]                                # (1, Tkv) broadcast
        if has_am:
            mh = am_ref[h] if am_per_head else am_ref[0]
            s = s + mh.astype(jnp.float32)                    # (Tq, Tkv)

        # online softmax update (f32 stats, bf16 exponent -> EUP-friendly)
        m_old = m_ref[h]
        m_new = jnp.maximum(m_old, jnp.max(s, axis=-1, keepdims=True))
        alpha = jnp.exp(m_old - m_new)                        # (Tq, 1) f32
        p = jnp.exp((s - m_new).astype(jnp.bfloat16))         # (Tq, Tkv) bf16
        l_ref[h] = alpha * l_ref[h] + jnp.sum(
            p.astype(jnp.float32), axis=-1, keepdims=True)
        acc_ref[h] = alpha * acc_ref[h] + jnp.dot(
            p, vh, preferred_element_type=jnp.float32)        # (Tq, D) f32
        m_ref[h] = m_new

    @pl.when(ki == nk - 1)
    def _():
        outs = [acc_ref[h] * pl.reciprocal(l_ref[h], approx=True)
                for h in range(heads_per_blk)]
        merged = outs[0] if heads_per_blk == 1 else jnp.concatenate(outs, -1)
        o_ref[0] = merged.astype(o_ref.dtype)   # one lane-dense full-width store


def pallas_attention(q_buf, k_buf, v_buf, kpm_add=None, attn_mask=None, *,
                     num_heads, head_dim, q_elem_off=0, k_elem_off=0,
                     v_elem_off=0, am_per_head=False, out_dtype=None):
    """q_buf/k_buf/v_buf: (N, S|Skv, >=M) merged-head buffers; Q/K/V are read
    at constant last-dim element offsets (enables fused QKV/KV buffers).
    kpm_add: (N,1,Skv) additive f32 or None.
    attn_mask: (H,S,Skv) bf16 (am_per_head=True) or (1,S,Skv) bf16, or None."""
    N, S = q_buf.shape[0], q_buf.shape[1]
    Skv = k_buf.shape[1]
    H, D = num_heads, head_dim
    M = H * D
    Hb = _pick_heads_per_block(H, D)
    HB = H // Hb
    blk = Hb * D
    qo, ko, vo = q_elem_off // blk, k_elem_off // blk, v_elem_off // blk

    Tq = _q_tile(S)
    Tkv = _kv_tile(Skv)
    nq, nkv = S // Tq, Skv // Tkv

    has_kpm = kpm_add is not None
    has_am = attn_mask is not None

    in_specs = [
        pl.BlockSpec((1, Tq, blk), lambda hb, n, qi, ki: (n, qi, qo + hb)),
        pl.BlockSpec((1, Tkv, blk), lambda hb, n, qi, ki: (n, ki, ko + hb)),
        pl.BlockSpec((1, Tkv, blk), lambda hb, n, qi, ki: (n, ki, vo + hb)),
    ]
    inputs = [q_buf, k_buf, v_buf]
    if has_kpm:
        in_specs.append(pl.BlockSpec((1, 1, Tkv),
                                     lambda hb, n, qi, ki: (n, 0, ki)))
        inputs.append(kpm_add)
    if has_am:
        if am_per_head:
            in_specs.append(pl.BlockSpec((Hb, Tq, Tkv),
                                         lambda hb, n, qi, ki: (hb, qi, ki)))
        else:
            in_specs.append(pl.BlockSpec((1, Tq, Tkv),
                                         lambda hb, n, qi, ki: (0, qi, ki)))
        inputs.append(attn_mask)

    kernel = functools.partial(_attn_kernel, heads_per_blk=Hb, head_dim=D,
                               has_kpm=has_kpm, has_am=has_am,
                               am_per_head=am_per_head)
    out_dtype = out_dtype or q_buf.dtype

    return pl.pallas_call(
        kernel,
        out_shape=jax.ShapeDtypeStruct((N, S, M), out_dtype),
        grid_spec=pltpu.PrefetchScalarGridSpec(
            num_scalar_prefetch=0,
            grid=(HB, N, nq, nkv),       # kv (reduction) axis innermost
            in_specs=in_specs,
            out_specs=pl.BlockSpec((1, Tq, blk),
                                   lambda hb, n, qi, ki: (n, qi, hb)),
            scratch_shapes=[
                pltpu.VMEM((Hb, Tq, 1), jnp.float32),   # running max m
                pltpu.VMEM((Hb, Tq, 1), jnp.float32),   # running denom l
                pltpu.VMEM((Hb, Tq, D), jnp.float32),   # running numerator
            ],
        ),
        compiler_params=pltpu.CompilerParams(
            dimension_semantics=("parallel", "parallel", "parallel",
                                 "arbitrary"),
            vmem_limit_bytes=_vmem_limit_bytes()),
    )(*inputs)


# --------------------------------------------------------------------------
# Wrapper module (plain-JAX glue around the Pallas kernels)
# --------------------------------------------------------------------------
class MultiheadAttentionPallas:
    def __init__(self, model_dim: int, num_heads: int, key):
        assert model_dim % num_heads == 0
        self.model_dim = model_dim
        self.num_heads = num_heads
        self.head_dim = model_dim // num_heads

        ks = jax.random.split(key, 8)
        init = lambda k, shape: (jax.random.normal(k, shape, jnp.float32)
                                 * (1.0 / math.sqrt(shape[-1])))
        # f32 master weights (also used by the pure-JAX reference)
        self.wq = init(ks[0], (model_dim, model_dim))
        self.bq = jax.random.normal(ks[1], (model_dim,), jnp.float32) * 0.01
        self.wk = init(ks[2], (model_dim, model_dim))
        self.bk = jax.random.normal(ks[3], (model_dim,), jnp.float32) * 0.01
        self.wv = init(ks[4], (model_dim, model_dim))
        self.bv = jax.random.normal(ks[5], (model_dim,), jnp.float32) * 0.01
        self.wo = init(ks[6], (model_dim, model_dim))
        self.bo = jax.random.normal(ks[7], (model_dim,), jnp.float32) * 0.01

        # Pre-transposed (Din, Dout) bf16 kernel weights.  The 1/sqrt(D) score
        # scale is folded into the Q projection (weights + bias) so no per-score
        # multiply is needed inside the attention kernel.
        inv_sqrt_d = 1.0 / math.sqrt(self.head_dim)
        self.wq_t = jnp.asarray(self.wq.T * inv_sqrt_d, _COMPUTE_DTYPE)
        self.bq_s = (self.bq * inv_sqrt_d).astype(jnp.float32)
        self.wk_t = jnp.asarray(self.wk.T, _COMPUTE_DTYPE)
        self.wv_t = jnp.asarray(self.wv.T, _COMPUTE_DTYPE)
        self.wo_t = jnp.asarray(self.wo.T, _COMPUTE_DTYPE)
        # Fused QKV (self-attention) and KV (cross-attention) weights.
        self.wqkv_t = jnp.concatenate([self.wq_t, self.wk_t, self.wv_t], axis=1)
        self.bqkv = jnp.concatenate([self.bq_s, self.bk, self.bv])
        self.wkv_t = jnp.concatenate([self.wk_t, self.wv_t], axis=1)
        self.bkv = jnp.concatenate([self.bk, self.bv])

        self.heads_per_block = _pick_heads_per_block(num_heads, self.head_dim)
        # Fused projection buffers can only be consumed directly (via BlockSpec
        # last-dim offsets) when the head-block width is 128-lane aligned.
        self._fused_buffer_ok = (self.heads_per_block * self.head_dim) % 128 == 0

    def convert_fast_attention(self):
        return None  # no-op: weights are already in the fused/fast layout

    def __call__(self, seqs, padding_mask, keys, key_padding_mask, values,
                 attn_mask=None):
        N, S, M = seqs.shape
        Skv = keys.shape[1]
        H, Dh = self.num_heads, self.head_dim
        cdt = _COMPUTE_DTYPE

        # --- additive masks (specialized away when None) ---
        # NOTE: -1e9 (not -inf) so fully-masked rows degrade gracefully.
        kpm_add = None
        if key_padding_mask is not None:
            kpm_add = jnp.where(key_padding_mask, jnp.float32(-1e9),
                                jnp.float32(0.0)).reshape(N, 1, Skv)
        am = None
        am_per_head = False
        if attn_mask is not None:
            am = attn_mask
            if am.ndim == 2:
                am = am[None]                       # (1,S,Skv) -> broadcast in-kernel
            else:
                assert am.ndim == 3 and am.shape[0] in (1, H), \
                    "attn_mask must be (S,Skv), (1,S,Skv) or (H,S,Skv)"
                am_per_head = am.shape[0] == H
            am = am.astype(cdt)

        # TODO(synk): the query `padding_mask` only zeroes padded outputs
        # downstream in the reference stack; it does not affect the attention
        # math and is intentionally unused here.

        attn_kwargs = dict(num_heads=H, head_dim=Dh, am_per_head=am_per_head)

        # --- projections + attention ---
        if (seqs is keys) and (keys is values):
            # self-attention: one fused (R, 3M) projection
            qkv = pallas_linear(seqs.reshape(N * S, M).astype(cdt),
                                self.wqkv_t, self.bqkv, out_dtype=cdt
                                ).reshape(N, S, 3 * M)
            if self._fused_buffer_ok:
                # consume the fused buffer directly via BlockSpec offsets
                attn_out = pallas_attention(
                    qkv, qkv, qkv, kpm_add, am,
                    q_elem_off=0, k_elem_off=M, v_elem_off=2 * M, **attn_kwargs)
            else:
                q = qkv[..., :M]; k = qkv[..., M:2 * M]; v = qkv[..., 2 * M:]
                attn_out = pallas_attention(q, k, v, kpm_add, am, **attn_kwargs)
        elif keys is values:
            # cross-attention with shared K/V source: fused (R, 2M) projection
            q = pallas_linear(seqs.reshape(N * S, M).astype(cdt),
                              self.wq_t, self.bq_s, out_dtype=cdt
                              ).reshape(N, S, M)
            kv = pallas_linear(keys.reshape(N * Skv, M).astype(cdt),
                               self.wkv_t, self.bkv, out_dtype=cdt
                               ).reshape(N, Skv, 2 * M)
            if self._fused_buffer_ok:
                attn_out = pallas_attention(
                    q, kv, kv, kpm_add, am,
                    k_elem_off=0, v_elem_off=M, **attn_kwargs)
            else:
                attn_out = pallas_attention(q, kv[..., :M], kv[..., M:],
                                            kpm_add, am, **attn_kwargs)
        else:
            q = pallas_linear(seqs.reshape(N * S, M).astype(cdt),
                              self.wq_t, self.bq_s, out_dtype=cdt
                              ).reshape(N, S, M)
            k = pallas_linear(keys.reshape(N * Skv, M).astype(cdt),
                              self.wk_t, self.bk, out_dtype=cdt
                              ).reshape(N, Skv, M)
            v = pallas_linear(values.reshape(N * Skv, M).astype(cdt),
                              self.wv_t, self.bv, out_dtype=cdt
                              ).reshape(N, Skv, M)
            attn_out = pallas_attention(q, k, v, kpm_add, am, **attn_kwargs)

        # --- output projection ---
        out = pallas_linear(attn_out.reshape(N * S, M),
                            self.wo_t, self.bo, out_dtype=seqs.dtype)
        return out.reshape(N, S, M)


# --------------------------------------------------------------------------
# Reference (pure JAX, f32) for a sanity check
# --------------------------------------------------------------------------
def reference_mha(mod, seqs, key_padding_mask, keys, values, attn_mask):
    N, S, M = seqs.shape
    Skv = keys.shape[1]
    H, D = mod.num_heads, mod.head_dim
    q = seqs @ mod.wq.T + mod.bq
    k = keys @ mod.wk.T + mod.bk
    v = values @ mod.wv.T + mod.bv
    q = q.reshape(N, S, H, D).transpose(0, 2, 1, 3)
    k = k.reshape(N, Skv, H, D).transpose(0, 2, 1, 3)
    v = v.reshape(N, Skv, H, D).transpose(0, 2, 1, 3)
    s = jnp.einsum("nhsd,nhkd->nhsk", q, k) / math.sqrt(D)
    if key_padding_mask is not None:
        s = s + jnp.where(key_padding_mask, -1e9, 0.0)[:, None, None, :]
    if attn_mask is not None:
        s = s + attn_mask[None]
    p = jax.nn.softmax(s, axis=-1)
    o = jnp.einsum("nhsk,nhkd->nhsd", p, v)
    o = o.transpose(0, 2, 1, 3).reshape(N, S, M)
    return o @ mod.wo.T + mod.bo


if __name__ == "__main__":
    key = jax.random.PRNGKey(0)
    k_mod, k_seq, k_key, k_val, k_am, k_mod2, k_seq2, k_am2 = \
        jax.random.split(key, 8)

    # Tolerance is sized for bf16 MXU operands / bf16 exp (f32 accumulation).
    TOL = dict(atol=1e-1, rtol=1e-1)

    # ---- Config A: tiny dims (M=32, H=4, D=8) ----
    N, S, Skv, M, H = 2, 8, 16, 32, 4
    mha = MultiheadAttentionPallas(model_dim=M, num_heads=H, key=k_mod)

    seqs = jax.random.normal(k_seq, (N, S, M), jnp.float32)
    keys = jax.random.normal(k_key, (N, Skv, M), jnp.float32)
    values = jax.random.normal(k_val, (N, Skv, M), jnp.float32)

    key_padding_mask = jnp.zeros((N, Skv), dtype=bool)
    key_padding_mask = key_padding_mask.at[1, -2:].set(True)
    padding_mask = jnp.zeros((N, S), dtype=bool)
    attn_mask = jax.random.normal(k_am, (H, S, Skv), jnp.float32) * 0.1

    # 1) cross-attention with key padding mask + per-head additive mask
    out = mha(seqs, padding_mask, keys, key_padding_mask, values,
              attn_mask=attn_mask)
    out = jax.block_until_ready(out)
    ref = reference_mha(mha, seqs, key_padding_mask, keys, values, attn_mask)
    assert out.shape == (N, S, M)
    assert jnp.allclose(out, ref, **TOL), "cross-attention mismatch vs reference"

    # 2) self-attention, no masks (fused-QKV projection, mask-free kernel)
    out2 = mha(seqs, padding_mask, seqs, None, seqs, attn_mask=None)
    out2 = jax.block_until_ready(out2)
    ref2 = reference_mha(mha, seqs, None, seqs, seqs, None)
    assert jnp.allclose(out2, ref2, **TOL), "self-attention mismatch vs reference"

    # ---- Config B: D=64 (M=256, H=4) -> exercises 128-lane head blocks, the
    # fused QKV buffer consumed via BlockSpec offsets, and the 2D-mask path ----
    Nb, Sb, Mb, Hb_ = 2, 8, 256, 4
    mha_b = MultiheadAttentionPallas(model_dim=Mb, num_heads=Hb_, key=k_mod2)
    seqs_b = jax.random.normal(k_seq2, (Nb, Sb, Mb), jnp.float32)
    padding_mask_b = jnp.zeros((Nb, Sb), dtype=bool)
    attn_mask_2d = jax.random.normal(k_am2, (Sb, Sb), jnp.float32) * 0.1

    out3 = mha_b(seqs_b, padding_mask_b, seqs_b, None, seqs_b,
                 attn_mask=attn_mask_2d)
    out3 = jax.block_until_ready(out3)
    ref3 = reference_mha(mha_b, seqs_b, None, seqs_b, seqs_b, attn_mask_2d)
    assert out3.shape == (Nb, Sb, Mb)
    assert jnp.allclose(out3, ref3, **TOL), "fused-buffer self-attn mismatch"

    print("KERNEL_OK")
</pallas_src>

<mosaic_0001>
module attributes {stable_mosaic.version = 11 : i64} {
  func.func @_linear_kernel(%arg0: i32, %arg1: i32, %arg2: i32, %arg3: memref<16x32xbf16, #tpu.memory_space<vmem>>, %arg4: memref<32x32xbf16, #tpu.memory_space<vmem>>, %arg5: memref<1x32xf32, #tpu.memory_space<vmem>>, %arg6: memref<16x32xbf16, #tpu.memory_space<vmem>>, %arg7: memref<16x32xf32, #tpu.memory_space<vmem>>) attributes {dimension_semantics = [#tpu.dimension_semantics<parallel>, #tpu.dimension_semantics<parallel>, #tpu.dimension_semantics<arbitrary>], iteration_bounds = array<i64: 1, 1, 1>, scalar_prefetch = 0 : i64, scratch_operands = 1 : i64, tpu.core_type = #tpu.core_type<tc>, window_params = [{transform_indices = @transform_0, window_bounds = array<i64: 16, 32>}, {transform_indices = @transform_1, window_bounds = array<i64: 32, 32>}, {transform_indices = @transform_2, window_bounds = array<i64: 1, 32>}, {transform_indices = @transform_3, window_bounds = array<i64: 16, 32>}]} {
    %c0_i32 = arith.constant 0 : i32
    %0 = arith.cmpi eq, %arg2, %c0_i32 : i32
    %1 = arith.extui %0 : i1 to i32
    %c0_i32_0 = arith.constant 0 : i32
    %2 = arith.cmpi ne, %1, %c0_i32_0 : i32
    scf.if %2 {
      %cst_10 = arith.constant 0.000000e+00 : f32
      %12 = vector.broadcast %cst_10 : f32 to vector<16x32xf32>
      %c0_11 = arith.constant 0 : index
      %c0_12 = arith.constant 0 : index
      %13 = vector.load %arg7[%c0_11, %c0_12] : memref<16x32xf32, #tpu.memory_space<vmem>>, vector<16x32xf32>
      tpu.vector_store %arg7[%c0_11, %c0_12], %12 {strides = array<i32>} : memref<16x32xf32, #tpu.memory_space<vmem>>, vector<16x32xf32>,
    } else {
    }
    %c0 = arith.constant 0 : index
    %c0_1 = arith.constant 0 : index
    %3 = vector.load %arg7[%c0, %c0_1] : memref<16x32xf32, #tpu.memory_space<vmem>>, vector<16x32xf32>
    %c0_2 = arith.constant 0 : index
    %c0_3 = arith.constant 0 : index
    %4 = vector.load %arg3[%c0_2, %c0_3] : memref<16x32xbf16, #tpu.memory_space<vmem>>, vector<16x32xbf16>
    %c0_4 = arith.constant 0 : index
    %c0_5 = arith.constant 0 : index
    %5 = vector.load %arg4[%c0_4, %c0_5] : memref<32x32xbf16, #tpu.memory_space<vmem>>, vector<32x32xbf16>
    %cst = arith.constant dense<0.000000e+00> : vector<16x32xf32>
    %6 = tpu.matmul %4, %5, %cst {dimension_numbers = #tpu.dot_dimension_numbers<[1], [0], [0], [1], [0, 0, 1, 1], [], []>} : vector<16x32xbf16>, vector<32x32xbf16>, vector<16x32xf32> -> vector<16x32xf32>
    %7 = arith.addf %3, %6 : vector<16x32xf32>
    %c0_6 = arith.constant 0 : index
    %c0_7 = arith.constant 0 : index
    %8 = vector.load %arg7[%c0_6, %c0_7] : memref<16x32xf32, #tpu.memory_space<vmem>>, vector<16x32xf32>
    tpu.vector_store %arg7[%c0_6, %c0_7], %7 {strides = array<i32>} : memref<16x32xf32, #tpu.memory_space<vmem>>, vector<16x32xf32>,
    %c0_i32_8 = arith.constant 0 : i32
    %9 = arith.cmpi eq, %arg2, %c0_i32_8 : i32
    %10 = arith.extui %9 : i1 to i32
    %c0_i32_9 = arith.constant 0 : i32
    %11 = arith.cmpi ne, %10, %c0_i32_9 : i32
    scf.if %11 {
      %c0_10 = arith.constant 0 : index
      %c0_11 = arith.constant 0 : index
      %12 = vector.load %arg7[%c0_10, %c0_11] : memref<16x32xf32, #tpu.memory_space<vmem>>, vector<16x32xf32>
      %c0_12 = arith.constant 0 : index
      %c0_13 = arith.constant 0 : index
      %13 = vector.load %arg5[%c0_12, %c0_13] : memref<1x32xf32, #tpu.memory_space<vmem>>, vector<1x32xf32>
      %14 = vector.broadcast %13 : vector<1x32xf32> to vector<16x32xf32>
      %15 = arith.addf %12, %14 : vector<16x32xf32>
      %16 = arith.truncf %15 : vector<16x32xf32> to vector<16x32xbf16>
      %c0_14 = arith.constant 0 : index
      %c0_15 = arith.constant 0 : index
      %17 = vector.load %arg6[%c0_14, %c0_15] : memref<16x32xbf16, #tpu.memory_space<vmem>>, vector<16x32xbf16>
      tpu.vector_store %arg6[%c0_14, %c0_15], %16 {strides = array<i32>} : memref<16x32xbf16, #tpu.memory_space<vmem>>, vector<16x32xbf16>,
    } else {
    }
    return
  }
  func.func @transform_0(%arg0: i32, %arg1: i32, %arg2: i32) -> (i32, i32) {
    %c0_i32 = arith.constant 0 : i32
    return %arg0, %arg2 : i32, i32
  }
  func.func @transform_1(%arg0: i32, %arg1: i32, %arg2: i32) -> (i32, i32) {
    %c0_i32 = arith.constant 0 : i32
    return %arg2, %arg1 : i32, i32
  }
  func.func @transform_2(%arg0: i32, %arg1: i32, %arg2: i32) -> (i32, i32) {
    %c0_i32 = arith.constant 0 : i32
    %c0_i32_0 = arith.constant 0 : i32
    return %c0_i32, %arg1 : i32, i32
  }
  func.func @transform_3(%arg0: i32, %arg1: i32, %arg2: i32) -> (i32, i32) {
    %c0_i32 = arith.constant 0 : i32
    return %arg0, %arg1 : i32, i32
  }
}

</mosaic_0001>

<bundles_post_ra>
// kernel: tpu_custom_call.1
= control target key start
LH: loop header
LB: loop body
LE: loop exit
PB: predicated region body
PF: predicated region fallthrough
CT: control target
= control target key end

     0   :  { %8 = vsyncpa [#allocation4], 0  ;;  %s350_s0 = inlined_call_operand.hbm [shape: bf16[16,32], index: 0, kind: input, shape index: {}]   ;;  %s351_s1 = inlined_call_operand.hbm [shape: bf16[32,32], index: 1, kind: input, shape index: {}]   ;;  %s352_s2 = inlined_call_operand.vmem [shape: f32[1,32], index: 2, kind: input, shape index: {}]   ;;  %s353_s3 = inlined_call_operand.hbm [shape: bf16[16,32], index: 3, kind: output, shape index: {}]  }
   0x1   :  { %9 = vsyncpa [#allocation7], 0 }
   0x2   :  { %10 = vsyncpa [#allocation5], 0  ;;  %s270_s12 = smov [#allocation3]   ;;  %s198_s16 = scalar_lea.hbm %s350_s0, 128 }
   0x3   :  { %s16_s13 = sshll.u32 %s270_s12, 4  ;;  %p199_p0 = scmp.ne.s32.totalorder %s350_s0, %s198_s16  ;;  %s17_s13 = int_to_ptr.vmem [resolvable:$true] %s16_s13 }
   0x4   :  { %p202_p1 = scmp.lt.u32.totalorder %s198_s16, %s350_s0 }
   0x6   :  { %p204_p2 = pnand %p202_p1, %p199_p0 }
   0x8   :  { %207 = shalt.err (!%p204_p2)
}
   0x9   :  { %s208_s21 = scalar_lea.vmem %s17_s13, 128  ;;  %p213_p4 = scmp.lt.s32.totalorder %s17_s13, %s17_s13 }
   0xa   :  { %p209_p3 = scmp.ne.s32.totalorder %s17_s13, %s208_s21  ;;  %p214_p5 = scmp.lt.s32.totalorder %s208_s21, %s208_s21 }
   0xc   :  { %p215_p6 = por %p214_p5, %p213_p4 }
   0xe   :  { %p216_p7 = pnand %p215_p6, %p209_p3 }
  0x10   :  { %219 = shalt.err (!%p216_p7)
}
  0x11   :  { %s271_s22 = smov 64   ;;  %s272_s23 = smov 4  }
  0x12   :  { %22 = dma.hbm_to_vmem [thread:$0]  %s350_s0, 128, %s17_s13, [#allocation4], %s271_s22, %s271_s22, %s272_s23  }
  0x13   :  { %s273_s26 = smov [#allocation6]   ;;  %s220_s30 = scalar_lea.hbm %s351_s1, 256 }
  0x14   :  { %s28_s27 = sshll.u32 %s273_s26, 4  ;;  %p221_p8 = scmp.ne.s32.totalorder %s351_s1, %s220_s30  ;;  %s29_s27 = int_to_ptr.vmem [resolvable:$true] %s28_s27 }
  0x15   :  { %p224_p9 = scmp.lt.u32.totalorder %s220_s30, %s351_s1 }
  0x17   :  { %p226_p10 = pnand %p224_p9, %p221_p8 }
  0x19   :  { %229 = shalt.err (!%p226_p10)
}
  0x1a   :  { %s230_s8 = scalar_lea.vmem %s29_s27, 256  ;;  %p235_p12 = scmp.lt.s32.totalorder %s29_s27, %s29_s27 }
  0x1b   :  { %p231_p11 = scmp.ne.s32.totalorder %s29_s27, %s230_s8  ;;  %p236_p13 = scmp.lt.s32.totalorder %s230_s8, %s230_s8 }
  0x1d   :  { %p237_p0 = por %p236_p13, %p235_p12 }
  0x1f   :  { %p238_p1 = pnand %p237_p0, %p231_p11 }
  0x21   :  { %241 = shalt.err (!%p238_p1)
}
  0x22   :  { %34 = dma.hbm_to_vmem [thread:$0]  %s351_s1, 256, %s29_s27, [#allocation7], %s271_s22, %s271_s22, %s272_s23  }
  0x23   :  { %264 = dma.done.wait [#allocation4], 128  }
  0x24   :  { %265 = vsyncadd [#allocation4], 4294967168 }
  0x25   :  { %266 = dma.done.wait [#allocation7], 256  }
  0x26   :  { %267 = vsyncadd [#allocation7], 4294967040  ;;  %vm48_vm0 = vcmask 261120   ;;  %v274_v0 = vmov 0.0   ;;  %vm275_vm1 = vmmov 0   ;;  %v195_v1 = vld [vmem:[#allocation6] sm:$0xff]  }
  0x27   :  { %180 = vmatprep.subr.bf16.mxu0 %v274_v0  ;;  %184 = vmatprep.mubr.msk.bf16.mxu0 %vm275_vm1, %v274_v0  ;;  %49 = vst.msk [vmem:[#allocation2] sm:$0xff] %vm48_vm0, %v274_v0  ;;  %50 = vst.msk [vmem:[#allocation2 + $0x8] sm:$0xff] %vm48_vm0, %v274_v0  ;;  %v196_v2 = vld [vmem:[#allocation6 + $0x8] sm:$0xff]   ;;  %v197_v3 = vld [vmem:[#allocation3] sm:$0xff]   ;;  %vm147_vm2 = vcmask 257024   ;;  %s276_s11 = smov [#allocation8]  }
  0x28   :  { %181 = vmatpush3.bf16.msra.mxu0 %v195_v1  ;;  %v172_v12 = vld [vmem:[%s352_s2] ss:$0 sm:$0xff]  ;;  %s155_s12 = sshll.u32 %s276_s11, 4  ;;  %s156_s12 = int_to_ptr.vmem [resolvable:$true] %s155_s12 }
  0x29   :  { %182 = vmatprep.subr.bf16.mxu0 %v274_v0  ;;  %s242_s13 = scalar_lea.vmem %s156_s12, 128  ;;  %p247_p3 = scmp.lt.s32.totalorder %s156_s12, %s156_s12 }
  0x2a   :  { %p243_p2 = scmp.ne.s32.totalorder %s156_s12, %s242_s13  ;;  %p248_p4 = scmp.lt.s32.totalorder %s242_s13, %s242_s13 }
  0x2c   :  { %183 = vmatpush3.bf16.msra.mxu0 %v196_v2  ;;  %p249_p5 = por %p248_p4, %p247_p3 }
  0x2e   :  { %v51_v4 = vld [vmem:[#allocation2] sm:$0xff]  ;;  %v52_v6 = vld [vmem:[#allocation2 + $0x8] sm:$0xff]  ;;  %p250_p6 = pnand %p249_p5, %p243_p2 }
  0x2f   :  { %185 = vmatmul.mubr.msk.bf16.vlgmr.msra.gmra.mrb[0].mxu0 %vm48_vm0, %v197_v3 }
 0x102   :  { %v114_v5 = vpop.f32.mrb[0].mxu0 }
 0x103   :  { %v121_v7 = vadd.f32 %v114_v5, %v51_v4  ;;  %v186_v8 = vpop.f32.mrb[1].mxu0 }
 0x104   :  { %v117_v9 = vpop.f32.mrb[2].mxu0 }
 0x105   :  { %123 = vst.msk [vmem:[#allocation2] sm:$0xff] %vm48_vm0, %v121_v7  ;;  %v122_v10 = vadd.f32 %v117_v9, %v52_v6  ;;  %v187_v11 = vpop.f32.mrb[3].mxu0 }
 0x107   :  { %124 = vst.msk [vmem:[#allocation2 + $0x8] sm:$0xff] %vm48_vm0, %v122_v10 }
 0x10c   :  { %v128_v13 = vld [vmem:[#allocation2] sm:$0xff] }
 0x10d   :  { %v137_v14 = vadd.f32 %v172_v12, %v128_v13 }
 0x10e   :  { %v129_v15 = vld [vmem:[#allocation2 + $0x8] sm:$0xff] }
 0x10f   :  { %v138_v16 = vadd.f32 %v172_v12, %v129_v15  ;;  %v175_v17 = vpack.c.bf16 %v137_v14, %v137_v14 }
 0x111   :  { %v176_v18 = vpack.c.bf16 %v138_v16, %v138_v16  ;;  %148 = vst.msk [vmem:[#allocation8] sm:$0xf] %vm147_vm2, %v175_v17 }
 0x113   :  { %149 = vst.msk [vmem:[#allocation8 + $0x4] sm:$0xf] %vm147_vm2, %v176_v18 }
 0x114   :  { %253 = shalt.err (!%p250_p6)
}
 0x115   :  { %s254_s15 = scalar_lea.hbm %s353_s3, 128 }
 0x116   :  { %p255_p7 = scmp.ne.s32.totalorder %s353_s3, %s254_s15  ;;  %p258_p8 = scmp.lt.u32.totalorder %s254_s15, %s353_s3 }
 0x118   :  { %p260_p9 = pnand %p258_p8, %p255_p7 }
 0x11a   :  { %263 = shalt.err (!%p260_p9)
}
 0x11b   :  { %161 = dma.vmem_to_hbm [thread:$0]  %s156_s12, 128, %s353_s3, [#allocation5], %s271_s22, %s271_s22, %s272_s23  }
 0x11c   :  { %268 = dma.done.wait [#allocation5], 128  }
 0x11d   :  { %269 = vsyncadd [#allocation5], 4294967168 }
 0x11e   :  { %165 = vsyncpa [#allocation4], 1 }
 0x11f   :  { %166 = vsyncpa [#allocation7], 1 }
 0x120   :  { %167 = vsyncpa [#allocation5], 1 }

</bundles_post_ra>
